<compile_context>
chip_gen: v7x
topology: tpu7x:2x2x1
jax: 0.10.0
libtpu: 0.0.40
codegen_flags: <defaults>
</compile_context>

<pallas_src>
import functools

import jax
import jax.numpy as jnp
from jax.experimental import pallas as pl
from jax.experimental.pallas import tpu as pltpu

# vgg19_bn "features" configuration ('M' = 2x2 max-pool, ints = conv out-channels)
VGG19_CFG = [64, 64, 'M', 128, 128, 'M', 256, 256, 256, 256, 'M',
             512, 512, 512, 512, 'M', 512, 512, 512, 512, 'M']

_BN_EPS = 1e-5
_IMAGENET_MEAN = (123.68, 116.779, 103.939)


# ----------------------------------------------------------------------------
# small helpers
# ----------------------------------------------------------------------------
def _largest_divisor_le(n, cap):
    cap = max(1, min(cap, n))
    best = 1
    for t in range(1, cap + 1):
        if n % t == 0:
            best = t
    return best


def _largest_even_divisor_le(n, cap):
    cap = max(2, min(cap, n))
    best = 2
    for t in range(2, cap + 1, 2):
        if n % t == 0:
            best = t
    return best


@functools.lru_cache(maxsize=1)
def _tpu_vmem_capacity():
    try:
        cap = int(pltpu.get_tpu_info().vmem_capacity_bytes)
        if cap <= 0:
            raise ValueError("bad vmem capacity")
    except Exception:
        cap = 64 << 20          # conservative fallback = v7x per-TC VMEM
    return cap


def _vmem_limit_bytes():
    cap = _tpu_vmem_capacity()
    return max(32 << 20, min(cap * 3 // 4, 96 << 20))


def _m_cap():
    # Rows of the flattened matmul per grid step.  v7x (64 MiB VMEM/TC) gets a
    # smaller cap so weights + f32 accumulator + double-buffered blocks fit.
    return 2048 if _tpu_vmem_capacity() <= (64 << 20) else 4096


# ----------------------------------------------------------------------------
# Pallas kernels
# ----------------------------------------------------------------------------
def _preproc_kernel(x_ref, mean_ref, o_ref):
    # x: (TH, W, 3) f32 ; mean: (1, 1, 3) f32 ; o: (TH, W, 3) bf16
    o_ref[...] = (x_ref[...] * 255.0 - mean_ref[...]).astype(o_ref.dtype)


def _conv_kernel(xm_ref, xh_ref, w_ref, scale_ref, shift_ref, o_ref):
    # xm: (TH, Wt+2, Cin) bf16   main rows of the zero-padded input
    # xh: (2,  Wt+2, Cin) bf16   next two padded rows (halo)
    # w:  (9, Cin, Cout)  bf16   taps ordered kh*3+kw
    # scale/shift: (1, Cout) f32 folded conv-bias + BatchNorm affine
    # o:  (TH, W, Cout)   bf16   (W <= Wt; garbage columns discarded at store)
    TH, W, Cout = o_ref.shape
    Wt = xm_ref.shape[1] - 2
    Cin = xm_ref.shape[-1]

    xm = xm_ref[...]
    xh = xh_ref[...]
    scale = scale_ref[...]
    shift = shift_ref[...]

    acc = jnp.zeros((TH * Wt, Cout), jnp.float32)
    for kw in range(3):
        # One materialization per kw: main rows + halo rows for this kw shift.
        slab = jnp.concatenate(
            [xm[:, kw:kw + Wt, :].reshape(TH * Wt, Cin),
             xh[:, kw:kw + Wt, :].reshape(2 * Wt, Cin)], axis=0)
        for kh in range(3):
            # kh*Wt is a multiple of 8 (Wt % 8 == 0) -> free leading-dim view.
            acc = acc + jnp.dot(slab[kh * Wt: kh * Wt + TH * Wt],
                                w_ref[kh * 3 + kw],
                                preferred_element_type=jnp.float32)

    y = jnp.maximum(acc * scale + shift, 0.0)
    y = y.reshape(TH, Wt, Cout)
    o_ref[...] = y[:, :W, :].astype(o_ref.dtype)


def _maxpool_kernel(x_ref, o_ref):
    # x: (THo, 2, Wo, 2*C)  -- H-pair as a leading dim, W-pair folded onto lanes
    # o: (THo, Wo, C)
    C = o_ref.shape[-1]
    x = x_ref[...]
    m = jnp.maximum(x[:, 0], x[:, 1])                 # max over the H pair
    o_ref[...] = jnp.maximum(m[..., :C], m[..., C:]).astype(o_ref.dtype)


# ----------------------------------------------------------------------------
# wrappers (grids / BlockSpecs; only cheap padding & free reshapes in XLA)
# ----------------------------------------------------------------------------
def preprocess(x_nhwc):
    N, H, W, C = x_nhwc.shape
    TH = _largest_divisor_le(H, 64)
    mean = jnp.asarray(_IMAGENET_MEAN, jnp.float32).reshape(1, 1, C)
    return pl.pallas_call(
        _preproc_kernel,
        out_shape=jax.ShapeDtypeStruct((N, H, W, C), jnp.bfloat16),
        grid=(N, H // TH),
        in_specs=[
            pl.BlockSpec((None, TH, W, C), lambda n, i: (n, i, 0, 0)),
            pl.BlockSpec((1, 1, C), lambda n, i: (0, 0, 0)),
        ],
        out_specs=pl.BlockSpec((None, TH, W, C), lambda n, i: (n, i, 0, 0)),
        compiler_params=pltpu.CompilerParams(
            dimension_semantics=("parallel", "parallel")),
    )(x_nhwc.astype(jnp.float32), mean)


def conv3x3_bn_relu(x_nhwc, w, scale, shift):
    """3x3 conv (pad=1, stride=1) + folded BN affine + ReLU.  w: (3,3,Cin,Cout)."""
    N, H, W, Cin = x_nhwc.shape
    Cout = w.shape[-1]
    assert H % 2 == 0 and H >= 2, "even spatial height required (VGG schedule satisfies this)"

    Wt = ((W + 7) // 8) * 8            # sublane-aligned flatten width (>= W)
    Wp = Wt + 2

    xb = x_nhwc.astype(jnp.bfloat16)
    wb = w.astype(jnp.bfloat16).reshape(9, Cin, Cout)
    # zero-pad: 1 row top/bottom, 1 col left, Wt-W+1 cols right -> (N, H+2, Wt+2, Cin)
    xp = jnp.pad(xb, ((0, 0), (1, 1), (1, Wt - W + 1), (0, 0)))

    # TH even, TH | H, and M = TH*Wt bounded per TPU generation.
    TH = _largest_even_divisor_le(H, max(2, _m_cap() // Wt))
    grid = (N, H // TH)
    th_half = TH // 2

    return pl.pallas_call(
        _conv_kernel,
        out_shape=jax.ShapeDtypeStruct((N, H, W, Cout), jnp.bfloat16),
        grid=grid,
        in_specs=[
            # main TH rows of the padded input for this output row block
            pl.BlockSpec((None, TH, Wp, Cin), lambda n, i: (n, i, 0, 0)),
            # 2-row halo: padded rows [(i+1)*TH, (i+1)*TH + 2)
            pl.BlockSpec((None, 2, Wp, Cin),
                         lambda n, i: (n, (i + 1) * th_half, 0, 0)),
            # VMEM-resident weights / affine (constant index maps)
            pl.BlockSpec((9, Cin, Cout), lambda n, i: (0, 0, 0)),
            pl.BlockSpec((1, Cout), lambda n, i: (0, 0)),
            pl.BlockSpec((1, Cout), lambda n, i: (0, 0)),
        ],
        out_specs=pl.BlockSpec((None, TH, W, Cout), lambda n, i: (n, i, 0, 0)),
        compiler_params=pltpu.CompilerParams(
            dimension_semantics=("parallel", "parallel"),
            vmem_limit_bytes=_vmem_limit_bytes()),
    )(xp, xp, wb,
      scale.reshape(1, Cout).astype(jnp.float32),
      shift.reshape(1, Cout).astype(jnp.float32))


def maxpool2x2(x_nhwc):
    N, H, W, C = x_nhwc.shape
    assert H % 2 == 0 and W % 2 == 0, "2x2 max-pool needs even spatial dims"
    Ho, Wo = H // 2, W // 2
    # free (contiguous) reshape: H -> (Ho, 2), (W, C) -> (Wo, 2*C)
    xr = x_nhwc.reshape(N, Ho, 2, Wo, 2 * C)
    THo = _largest_divisor_le(Ho, max(1, 4096 // max(Wo, 1)))
    return pl.pallas_call(
        _maxpool_kernel,
        out_shape=jax.ShapeDtypeStruct((N, Ho, Wo, C), x_nhwc.dtype),
        grid=(N, Ho // THo),
        in_specs=[pl.BlockSpec((None, THo, 2, Wo, 2 * C),
                               lambda n, i: (n, i, 0, 0, 0))],
        out_specs=pl.BlockSpec((None, THo, Wo, C), lambda n, i: (n, i, 0, 0)),
        compiler_params=pltpu.CompilerParams(
            dimension_semantics=("parallel", "parallel")),
    )(xr)


def vgg_forward(x_nchw, params):
    """Equivalent of: x = x*255 - mean ; x = vgg19_bn(pretrained).features(x)."""
    x = jnp.transpose(x_nchw, (0, 2, 3, 1)).astype(jnp.float32)   # NCHW -> NHWC
    x = preprocess(x)                                             # -> bf16
    li = 0
    for v in VGG19_CFG:
        if v == 'M':
            x = maxpool2x2(x)
        else:
            w, scale, shift = params[li]
            x = conv3x3_bn_relu(x, w, scale, shift)
            li += 1
    return jnp.transpose(x.astype(jnp.float32), (0, 3, 1, 2))     # NHWC -> NCHW


# ----------------------------------------------------------------------------
# deterministic synthetic parameters (shapes match vgg19_bn.features)
# ----------------------------------------------------------------------------
def init_params(key):
    params = []
    cin = 3
    k = key
    for v in VGG19_CFG:
        if v == 'M':
            continue
        cout = v
        k, wk = jax.random.split(k)
        w = jax.random.normal(wk, (3, 3, cin, cout), jnp.float32) * jnp.sqrt(2.0 / (9 * cin))
        bias = jnp.zeros((cout,), jnp.float32)          # conv bias
        gamma = jnp.ones((cout,), jnp.float32)          # BN weight
        beta = jnp.zeros((cout,), jnp.float32)          # BN bias
        rmean = jnp.zeros((cout,), jnp.float32)         # BN running mean
        rvar = jnp.ones((cout,), jnp.float32)           # BN running var
        scale = gamma / jnp.sqrt(rvar + _BN_EPS)
        shift = (bias - rmean) * scale + beta
        params.append((w, scale, shift))
        cin = cout
    return params


# ----------------------------------------------------------------------------
# lightweight numerical self-check (aligned / padded-width conv paths + pools)
# ----------------------------------------------------------------------------
def _conv_ref(xb, wb, scale, shift):
    xf = xb.astype(jnp.float32)
    wf = wb.astype(jnp.float32)
    _, H, W, _ = xf.shape
    xp = jnp.pad(xf, ((0, 0), (1, 1), (1, 1), (0, 0)))
    acc = 0.0
    for kh in range(3):
        for kw in range(3):
            acc = acc + jnp.einsum('nhwc,cd->nhwd',
                                   xp[:, kh:kh + H, kw:kw + W, :], wf[kh, kw])
    return jnp.maximum(acc * scale + shift, 0.0)


def _self_check(key):
    conv_cases = (
        (8, 8, 64, 128),    # W % 8 == 0   (Wt == W)
        (4, 14, 64, 128),   # W % 8 != 0   (padded-width path, like block-5 @224)
        (8, 8, 3, 64),      # first-layer channel count
    )
    for (h, w_sp, cin, cout) in conv_cases:
        k1, k2, k3, k4, key = jax.random.split(key, 5)
        x = jax.random.normal(k1, (1, h, w_sp, cin), jnp.float32).astype(jnp.bfloat16)
        w = jax.random.normal(k2, (3, 3, cin, cout), jnp.float32) * 0.1
        scale = jax.random.uniform(k3, (cout,), jnp.float32, 0.5, 1.5)
        shift = jax.random.normal(k4, (cout,), jnp.float32) * 0.1
        got = conv3x3_bn_relu(x, w, scale, shift).astype(jnp.float32)
        ref = _conv_ref(x, w.astype(jnp.bfloat16), scale, shift)
        assert bool(jnp.allclose(got, ref, rtol=3e-2, atol=3e-2)), \
            f"conv mismatch at {(h, w_sp, cin, cout)}"

    kx, ky, key = jax.random.split(key, 3)
    x = jax.random.normal(kx, (1, 8, 8, 64), jnp.float32).astype(jnp.bfloat16)
    got = maxpool2x2(x).astype(jnp.float32)
    ref = x.astype(jnp.float32).reshape(1, 4, 2, 4, 2, 64).max(axis=(2, 4))
    assert bool(jnp.allclose(got, ref)), "maxpool mismatch"

    x = jax.random.normal(ky, (1, 2, 2, 128), jnp.float32).astype(jnp.bfloat16)
    got = maxpool2x2(x).astype(jnp.float32)
    ref = x.astype(jnp.float32).reshape(1, 1, 2, 1, 2, 128).max(axis=(2, 4))
    assert bool(jnp.allclose(got, ref)), "maxpool (2x2 -> 1x1) mismatch"


if __name__ == "__main__":
    key = jax.random.PRNGKey(0)
    ckey, pkey, xkey = jax.random.split(key, 3)

    _self_check(ckey)

    params = init_params(pkey)
    # Small input: batch=2, 3 channels, 32x32 (min spatial for 5 max-pools).
    x = jax.random.uniform(xkey, (2, 3, 32, 32), dtype=jnp.float32)

    fwd = jax.jit(vgg_forward)
    out = fwd(x, params)
    jax.block_until_ready(out)

    assert out.shape == (2, 512, 1, 1), out.shape
    assert out.dtype == jnp.float32
    assert bool(jnp.all(jnp.isfinite(out))), "non-finite values in output"
    print("KERNEL_OK")
</pallas_src>

<mosaic_0001>
module attributes {stable_mosaic.version = 11 : i64} {
  func.func @_conv_kernel(%arg0: i32, %arg1: i32, %arg2: memref<1x8x10x64xbf16, #tpu.memory_space<vmem>>, %arg3: memref<1x2x10x64xbf16, #tpu.memory_space<vmem>>, %arg4: memref<9x64x128xbf16, #tpu.memory_space<vmem>>, %arg5: memref<1x128xf32, #tpu.memory_space<vmem>>, %arg6: memref<1x128xf32, #tpu.memory_space<vmem>>, %arg7: memref<1x8x8x128xbf16, #tpu.memory_space<vmem>>) attributes {dimension_semantics = [#tpu.dimension_semantics<parallel>, #tpu.dimension_semantics<parallel>], iteration_bounds = array<i64: 1, 1>, scalar_prefetch = 0 : i64, scratch_operands = 0 : i64, tpu.core_type = #tpu.core_type<tc>, window_params = [{transform_indices = @transform_0, window_bounds = array<i64: 1, 8, 10, 64>}, {transform_indices = @transform_1, window_bounds = array<i64: 1, 2, 10, 64>}, {pipeline_mode = #tpu.pipeline_mode<synchronous>, transform_indices = @transform_2, window_bounds = array<i64: 9, 64, 128>}, {pipeline_mode = #tpu.pipeline_mode<synchronous>, transform_indices = @transform_3, window_bounds = array<i64: 1, 128>}, {pipeline_mode = #tpu.pipeline_mode<synchronous>, transform_indices = @transform_4, window_bounds = array<i64: 1, 128>}, {transform_indices = @transform_5, window_bounds = array<i64: 1, 8, 8, 128>}]} {
    %c0 = arith.constant 0 : index
    %c0_0 = arith.constant 0 : index
    %c0_1 = arith.constant 0 : index
    %c0_2 = arith.constant 0 : index
    %0 = vector.load %arg2[%c0, %c0_0, %c0_1, %c0_2] : memref<1x8x10x64xbf16, #tpu.memory_space<vmem>>, vector<1x8x10x64xbf16>
    %1 = vector.shape_cast %0 : vector<1x8x10x64xbf16> to vector<8x10x64xbf16>
    %c0_3 = arith.constant 0 : index
    %c0_4 = arith.constant 0 : index
    %c0_5 = arith.constant 0 : index
    %c0_6 = arith.constant 0 : index
    %2 = vector.load %arg3[%c0_3, %c0_4, %c0_5, %c0_6] : memref<1x2x10x64xbf16, #tpu.memory_space<vmem>>, vector<1x2x10x64xbf16>
    %3 = vector.shape_cast %2 : vector<1x2x10x64xbf16> to vector<2x10x64xbf16>
    %c0_7 = arith.constant 0 : index
    %c0_8 = arith.constant 0 : index
    %4 = vector.load %arg5[%c0_7, %c0_8] : memref<1x128xf32, #tpu.memory_space<vmem>>, vector<1x128xf32>
    %c0_9 = arith.constant 0 : index
    %c0_10 = arith.constant 0 : index
    %5 = vector.load %arg6[%c0_9, %c0_10] : memref<1x128xf32, #tpu.memory_space<vmem>>, vector<1x128xf32>
    %cst = arith.constant 0.000000e+00 : f32
    %6 = vector.broadcast %cst : f32 to vector<64x128xf32>
    %7 = vector.extract_strided_slice %1 {offsets = [0, 0, 0], sizes = [8, 8, 64], strides = [1, 1, 1]} : vector<8x10x64xbf16> to vector<8x8x64xbf16>
    %8 = vector.shape_cast %7 : vector<8x8x64xbf16> to vector<64x64xbf16>
    %9 = vector.extract_strided_slice %3 {offsets = [0, 0, 0], sizes = [2, 8, 64], strides = [1, 1, 1]} : vector<2x10x64xbf16> to vector<2x8x64xbf16>
    %10 = vector.shape_cast %9 : vector<2x8x64xbf16> to vector<16x64xbf16>
    %11 = tpu.concatenate %8, %10 in 0 : vector<64x64xbf16>, vector<16x64xbf16> -> vector<80x64xbf16>
    %12 = vector.extract_strided_slice %11 {offsets = [0, 0], sizes = [64, 64], strides = [1, 1]} : vector<80x64xbf16> to vector<64x64xbf16>
    %c0_11 = arith.constant 0 : index
    %c0_12 = arith.constant 0 : index
    %c0_13 = arith.constant 0 : index
    %13 = vector.load %arg4[%c0_11, %c0_12, %c0_13] : memref<9x64x128xbf16, #tpu.memory_space<vmem>>, vector<1x64x128xbf16>
    %14 = vector.shape_cast %13 : vector<1x64x128xbf16> to vector<64x128xbf16>
    %cst_14 = arith.constant dense<0.000000e+00> : vector<64x128xf32>
    %15 = tpu.matmul %12, %14, %cst_14 {dimension_numbers = #tpu.dot_dimension_numbers<[1], [0], [0], [1], [0, 0, 1, 1], [], []>} : vector<64x64xbf16>, vector<64x128xbf16>, vector<64x128xf32> -> vector<64x128xf32>
    %16 = arith.addf %6, %15 : vector<64x128xf32>
    %17 = vector.extract_strided_slice %11 {offsets = [8, 0], sizes = [64, 64], strides = [1, 1]} : vector<80x64xbf16> to vector<64x64xbf16>
    %c3 = arith.constant 3 : index
    %c0_15 = arith.constant 0 : index
    %c0_16 = arith.constant 0 : index
    %18 = vector.load %arg4[%c3, %c0_15, %c0_16] : memref<9x64x128xbf16, #tpu.memory_space<vmem>>, vector<1x64x128xbf16>
    %19 = vector.shape_cast %18 : vector<1x64x128xbf16> to vector<64x128xbf16>
    %cst_17 = arith.constant dense<0.000000e+00> : vector<64x128xf32>
    %20 = tpu.matmul %17, %19, %cst_17 {dimension_numbers = #tpu.dot_dimension_numbers<[1], [0], [0], [1], [0, 0, 1, 1], [], []>} : vector<64x64xbf16>, vector<64x128xbf16>, vector<64x128xf32> -> vector<64x128xf32>
    %21 = arith.addf %16, %20 : vector<64x128xf32>
    %22 = vector.extract_strided_slice %11 {offsets = [16, 0], sizes = [64, 64], strides = [1, 1]} : vector<80x64xbf16> to vector<64x64xbf16>
    %c6 = arith.constant 6 : index
    %c0_18 = arith.constant 0 : index
    %c0_19 = arith.constant 0 : index
    %23 = vector.load %arg4[%c6, %c0_18, %c0_19] : memref<9x64x128xbf16, #tpu.memory_space<vmem>>, vector<1x64x128xbf16>
    %24 = vector.shape_cast %23 : vector<1x64x128xbf16> to vector<64x128xbf16>
    %cst_20 = arith.constant dense<0.000000e+00> : vector<64x128xf32>
    %25 = tpu.matmul %22, %24, %cst_20 {dimension_numbers = #tpu.dot_dimension_numbers<[1], [0], [0], [1], [0, 0, 1, 1], [], []>} : vector<64x64xbf16>, vector<64x128xbf16>, vector<64x128xf32> -> vector<64x128xf32>
    %26 = arith.addf %21, %25 : vector<64x128xf32>
    %27 = vector.extract_strided_slice %1 {offsets = [0, 1, 0], sizes = [8, 8, 64], strides = [1, 1, 1]} : vector<8x10x64xbf16> to vector<8x8x64xbf16>
    %28 = vector.shape_cast %27 : vector<8x8x64xbf16> to vector<64x64xbf16>
    %29 = vector.extract_strided_slice %3 {offsets = [0, 1, 0], sizes = [2, 8, 64], strides = [1, 1, 1]} : vector<2x10x64xbf16> to vector<2x8x64xbf16>
    %30 = vector.shape_cast %29 : vector<2x8x64xbf16> to vector<16x64xbf16>
    %31 = tpu.concatenate %28, %30 in 0 : vector<64x64xbf16>, vector<16x64xbf16> -> vector<80x64xbf16>
    %32 = vector.extract_strided_slice %31 {offsets = [0, 0], sizes = [64, 64], strides = [1, 1]} : vector<80x64xbf16> to vector<64x64xbf16>
    %c1 = arith.constant 1 : index
    %c0_21 = arith.constant 0 : index
    %c0_22 = arith.constant 0 : index
    %33 = vector.load %arg4[%c1, %c0_21, %c0_22] : memref<9x64x128xbf16, #tpu.memory_space<vmem>>, vector<1x64x128xbf16>
    %34 = vector.shape_cast %33 : vector<1x64x128xbf16> to vector<64x128xbf16>
    %cst_23 = arith.constant dense<0.000000e+00> : vector<64x128xf32>
    %35 = tpu.matmul %32, %34, %cst_23 {dimension_numbers = #tpu.dot_dimension_numbers<[1], [0], [0], [1], [0, 0, 1, 1], [], []>} : vector<64x64xbf16>, vector<64x128xbf16>, vector<64x128xf32> -> vector<64x128xf32>
    %36 = arith.addf %26, %35 : vector<64x128xf32>
    %37 = vector.extract_strided_slice %31 {offsets = [8, 0], sizes = [64, 64], strides = [1, 1]} : vector<80x64xbf16> to vector<64x64xbf16>
    %c4 = arith.constant 4 : index
    %c0_24 = arith.constant 0 : index
    %c0_25 = arith.constant 0 : index
    %38 = vector.load %arg4[%c4, %c0_24, %c0_25] : memref<9x64x128xbf16, #tpu.memory_space<vmem>>, vector<1x64x128xbf16>
    %39 = vector.shape_cast %38 : vector<1x64x128xbf16> to vector<64x128xbf16>
    %cst_26 = arith.constant dense<0.000000e+00> : vector<64x128xf32>
    %40 = tpu.matmul %37, %39, %cst_26 {dimension_numbers = #tpu.dot_dimension_numbers<[1], [0], [0], [1], [0, 0, 1, 1], [], []>} : vector<64x64xbf16>, vector<64x128xbf16>, vector<64x128xf32> -> vector<64x128xf32>
    %41 = arith.addf %36, %40 : vector<64x128xf32>
    %42 = vector.extract_strided_slice %31 {offsets = [16, 0], sizes = [64, 64], strides = [1, 1]} : vector<80x64xbf16> to vector<64x64xbf16>
    %c7 = arith.constant 7 : index
    %c0_27 = arith.constant 0 : index
    %c0_28 = arith.constant 0 : index
    %43 = vector.load %arg4[%c7, %c0_27, %c0_28] : memref<9x64x128xbf16, #tpu.memory_space<vmem>>, vector<1x64x128xbf16>
    %44 = vector.shape_cast %43 : vector<1x64x128xbf16> to vector<64x128xbf16>
    %cst_29 = arith.constant dense<0.000000e+00> : vector<64x128xf32>
    %45 = tpu.matmul %42, %44, %cst_29 {dimension_numbers = #tpu.dot_dimension_numbers<[1], [0], [0], [1], [0, 0, 1, 1], [], []>} : vector<64x64xbf16>, vector<64x128xbf16>, vector<64x128xf32> -> vector<64x128xf32>
    %46 = arith.addf %41, %45 : vector<64x128xf32>
    %47 = vector.extract_strided_slice %1 {offsets = [0, 2, 0], sizes = [8, 8, 64], strides = [1, 1, 1]} : vector<8x10x64xbf16> to vector<8x8x64xbf16>
    %48 = vector.shape_cast %47 : vector<8x8x64xbf16> to vector<64x64xbf16>
    %49 = vector.extract_strided_slice %3 {offsets = [0, 2, 0], sizes = [2, 8, 64], strides = [1, 1, 1]} : vector<2x10x64xbf16> to vector<2x8x64xbf16>
    %50 = vector.shape_cast %49 : vector<2x8x64xbf16> to vector<16x64xbf16>
    %51 = tpu.concatenate %48, %50 in 0 : vector<64x64xbf16>, vector<16x64xbf16> -> vector<80x64xbf16>
    %52 = vector.extract_strided_slice %51 {offsets = [0, 0], sizes = [64, 64], strides = [1, 1]} : vector<80x64xbf16> to vector<64x64xbf16>
    %c2 = arith.constant 2 : index
    %c0_30 = arith.constant 0 : index
    %c0_31 = arith.constant 0 : index
    %53 = vector.load %arg4[%c2, %c0_30, %c0_31] : memref<9x64x128xbf16, #tpu.memory_space<vmem>>, vector<1x64x128xbf16>
    %54 = vector.shape_cast %53 : vector<1x64x128xbf16> to vector<64x128xbf16>
    %cst_32 = arith.constant dense<0.000000e+00> : vector<64x128xf32>
    %55 = tpu.matmul %52, %54, %cst_32 {dimension_numbers = #tpu.dot_dimension_numbers<[1], [0], [0], [1], [0, 0, 1, 1], [], []>} : vector<64x64xbf16>, vector<64x128xbf16>, vector<64x128xf32> -> vector<64x128xf32>
    %56 = arith.addf %46, %55 : vector<64x128xf32>
    %57 = vector.extract_strided_slice %51 {offsets = [8, 0], sizes = [64, 64], strides = [1, 1]} : vector<80x64xbf16> to vector<64x64xbf16>
    %c5 = arith.constant 5 : index
    %c0_33 = arith.constant 0 : index
    %c0_34 = arith.constant 0 : index
    %58 = vector.load %arg4[%c5, %c0_33, %c0_34] : memref<9x64x128xbf16, #tpu.memory_space<vmem>>, vector<1x64x128xbf16>
    %59 = vector.shape_cast %58 : vector<1x64x128xbf16> to vector<64x128xbf16>
    %cst_35 = arith.constant dense<0.000000e+00> : vector<64x128xf32>
    %60 = tpu.matmul %57, %59, %cst_35 {dimension_numbers = #tpu.dot_dimension_numbers<[1], [0], [0], [1], [0, 0, 1, 1], [], []>} : vector<64x64xbf16>, vector<64x128xbf16>, vector<64x128xf32> -> vector<64x128xf32>
    %61 = arith.addf %56, %60 : vector<64x128xf32>
    %62 = vector.extract_strided_slice %51 {offsets = [16, 0], sizes = [64, 64], strides = [1, 1]} : vector<80x64xbf16> to vector<64x64xbf16>
    %c8 = arith.constant 8 : index
    %c0_36 = arith.constant 0 : index
    %c0_37 = arith.constant 0 : index
    %63 = vector.load %arg4[%c8, %c0_36, %c0_37] : memref<9x64x128xbf16, #tpu.memory_space<vmem>>, vector<1x64x128xbf16>
    %64 = vector.shape_cast %63 : vector<1x64x128xbf16> to vector<64x128xbf16>
    %cst_38 = arith.constant dense<0.000000e+00> : vector<64x128xf32>
    %65 = tpu.matmul %62, %64, %cst_38 {dimension_numbers = #tpu.dot_dimension_numbers<[1], [0], [0], [1], [0, 0, 1, 1], [], []>} : vector<64x64xbf16>, vector<64x128xbf16>, vector<64x128xf32> -> vector<64x128xf32>
    %66 = arith.addf %61, %65 : vector<64x128xf32>
    %67 = vector.broadcast %4 : vector<1x128xf32> to vector<64x128xf32>
    %68 = arith.mulf %66, %67 : vector<64x128xf32>
    %69 = vector.broadcast %5 : vector<1x128xf32> to vector<64x128xf32>
    %70 = arith.addf %68, %69 : vector<64x128xf32>
    %cst_39 = arith.constant 0.000000e+00 : f32
    %71 = vector.broadcast %cst_39 : f32 to vector<64x128xf32>
    %72 = arith.maximumf %70, %71 : vector<64x128xf32>
    %73 = vector.shape_cast %72 : vector<64x128xf32> to vector<8x8x128xf32>
    %74 = arith.truncf %73 : vector<8x8x128xf32> to vector<8x8x128xbf16>
    %c0_40 = arith.constant 0 : index
    %c0_41 = arith.constant 0 : index
    %c0_42 = arith.constant 0 : index
    %c0_43 = arith.constant 0 : index
    %75 = vector.load %arg7[%c0_40, %c0_41, %c0_42, %c0_43] : memref<1x8x8x128xbf16, #tpu.memory_space<vmem>>, vector<1x8x8x128xbf16>
    %76 = vector.shape_cast %75 : vector<1x8x8x128xbf16> to vector<8x8x128xbf16>
    %77 = vector.shape_cast %74 : vector<8x8x128xbf16> to vector<1x8x8x128xbf16>
    tpu.vector_store %arg7[%c0_40, %c0_41, %c0_42, %c0_43], %77 {strides = array<i32>} : memref<1x8x8x128xbf16, #tpu.memory_space<vmem>>, vector<1x8x8x128xbf16>,
    return
  }
  func.func @transform_0(%arg0: i32, %arg1: i32) -> (i32, i32, i32, i32) {
    %c0_i32 = arith.constant 0 : i32
    %c0_i32_0 = arith.constant 0 : i32
    %c0_i32_1 = arith.constant 0 : i32
    return %arg0, %arg1, %c0_i32, %c0_i32_0 : i32, i32, i32, i32
  }
  func.func @transform_1(%arg0: i32, %arg1: i32) -> (i32, i32, i32, i32) {
    %c1_i32 = arith.constant 1 : i32
    %0 = arith.addi %arg1, %c1_i32 : i32
    %c4_i32 = arith.constant 4 : i32
    %1 = arith.muli %0, %c4_i32 : i32
    %c0_i32 = arith.constant 0 : i32
    %c0_i32_0 = arith.constant 0 : i32
    %c0_i32_1 = arith.constant 0 : i32
    return %arg0, %1, %c0_i32, %c0_i32_0 : i32, i32, i32, i32
  }
  func.func @transform_2(%arg0: i32, %arg1: i32) -> (i32, i32, i32) {
    %c0_i32 = arith.constant 0 : i32
    %c0_i32_0 = arith.constant 0 : i32
    %c0_i32_1 = arith.constant 0 : i32
    %c0_i32_2 = arith.constant 0 : i32
    return %c0_i32, %c0_i32_0, %c0_i32_1 : i32, i32, i32
  }
  func.func @transform_3(%arg0: i32, %arg1: i32) -> (i32, i32) {
    %c0_i32 = arith.constant 0 : i32
    %c0_i32_0 = arith.constant 0 : i32
    %c0_i32_1 = arith.constant 0 : i32
    return %c0_i32, %c0_i32_0 : i32, i32
  }
  func.func @transform_4(%arg0: i32, %arg1: i32) -> (i32, i32) {
    %c0_i32 = arith.constant 0 : i32
    %c0_i32_0 = arith.constant 0 : i32
    %c0_i32_1 = arith.constant 0 : i32
    return %c0_i32, %c0_i32_0 : i32, i32
  }
  func.func @transform_5(%arg0: i32, %arg1: i32) -> (i32, i32, i32, i32) {
    %c0_i32 = arith.constant 0 : i32
    %c0_i32_0 = arith.constant 0 : i32
    %c0_i32_1 = arith.constant 0 : i32
    return %arg0, %arg1, %c0_i32, %c0_i32_0 : i32, i32, i32, i32
  }
}

</mosaic_0001>

<bundles_post_ra>
// kernel: tpu_custom_call.1
= control target key start
LH: loop header
LB: loop body
LE: loop exit
PB: predicated region body
PF: predicated region fallthrough
CT: control target
= control target key end

     0   :  { %10 = vsyncpa [#allocation3], 0  ;;  %s2377_s0 = inlined_call_operand.hbm [shape: bf16[1,10,10,64], index: 0, kind: input, shape index: {}]   ;;  %s2378_s1 = inlined_call_operand.hbm [shape: bf16[1,10,10,64], index: 1, kind: input, shape index: {}]   ;;  %s2379_s2 = inlined_call_operand.hbm [shape: bf16[9,64,128], index: 2, kind: input, shape index: {}]   ;;  %s2380_s3 = inlined_call_operand.vmem [shape: f32[1,128], index: 3, kind: input, shape index: {}]   ;;  %s2381_s4 = inlined_call_operand.vmem [shape: f32[1,128], index: 4, kind: input, shape index: {}]   ;;  %s2382_s5 = inlined_call_operand.hbm [shape: bf16[1,8,8,128], index: 5, kind: output, shape index: {}]  }
   0x1   :  { %11 = vsyncpa [#allocation6], 0 }
   0x2   :  { %12 = vsyncpa [#allocation4], 0  ;;  %s1462_s20 = scalar_lea.hbm %s2378_s1, 1024  ;;  %s2017_s21 = smov [#allocation5]  }
   0x3   :  { %s36_s22 = sshll.u32 %s2017_s21, 4  ;;  %s2018_s23 = smov [#allocation2]   ;;  %s37_s22 = int_to_ptr.vmem [resolvable:$true] %s36_s22 }
   0x4   :  { %s18_s24 = sshll.u32 %s2018_s23, 4  ;;  %s1944_s27 = scalar_lea.hbm %s2378_s1, 1280  ;;  %s19_s24 = int_to_ptr.vmem [resolvable:$true] %s18_s24 }
   0x5   :  { %p1921_p0 = scmp.ne.s32.totalorder %s1462_s20, %s1944_s27  ;;  %p1923_p1 = scmp.lt.u32.totalorder %s1462_s20, %s2378_s1 }
   0x6   :  { %p1924_p2 = scmp.lt.u32.totalorder %s1944_s27, %s1944_s27  ;;  %p1926_p4 = scmp.lt.u32.totalorder %s1944_s27, %s1462_s20 }
   0x8   :  { %p1925_p3 = por %p1924_p2, %p1923_p1 }
   0xa   :  { %p1927_p5 = por %p1926_p4, %p1925_p3 }
   0xc   :  { %p1928_p6 = pnand %p1927_p5, %p1921_p0 }
   0xe   :  { %1931 = shalt.err (!%p1928_p6)
}
   0xf   :  { %s1932_s30 = scalar_lea.vmem %s37_s22, 256  ;;  %p1937_p8 = scmp.lt.s32.totalorder %s37_s22, %s37_s22 }
  0x10   :  { %p1933_p7 = scmp.ne.s32.totalorder %s37_s22, %s1932_s30  ;;  %p1938_p9 = scmp.lt.s32.totalorder %s1932_s30, %s1932_s30 }
  0x12   :  { %p1939_p10 = por %p1938_p9, %p1937_p8 }
  0x14   :  { %p1940_p11 = pnand %p1939_p10, %p1933_p7 }
  0x16   :  { %1943 = shalt.err (!%p1940_p11)
}
  0x17   :  { %s2019_s6 = smov 64   ;;  %s2020_s7 = smov 4  }
  0x18   :  { %42 = dma.hbm_to_vmem [thread:$0]  %s1462_s20, 256, %s37_s22, [#allocation6], %s2019_s6, %s2019_s6, %s2020_s7  }
  0x19   :  { %s1945_s9 = scalar_lea.hbm %s2377_s0, 1024  ;;  %s1947_s14 = scalar_lea.hbm %s2377_s0, 1280 }
  0x1a   :  { %p1946_p12 = scmp.ne.s32.totalorder %s2377_s0, %s1945_s9  ;;  %p1948_p13 = scmp.lt.u32.totalorder %s1947_s14, %s1945_s9 }
  0x1b   :  { %p1949_p0 = scmp.lt.u32.totalorder %s1945_s9, %s2377_s0 }
  0x1d   :  { %p1950_p1 = por %p1949_p0, %p1948_p13 }
  0x1f   :  { %p1951_p2 = pnand %p1950_p1, %p1946_p12 }
  0x21   :  { %1954 = shalt.err (!%p1951_p2)
}
  0x22   :  { %s1955_s17 = scalar_lea.vmem %s19_s24, 1024  ;;  %p1960_p4 = scmp.lt.s32.totalorder %s19_s24, %s19_s24 }
  0x23   :  { %p1956_p3 = scmp.ne.s32.totalorder %s19_s24, %s1955_s17  ;;  %p1961_p5 = scmp.lt.s32.totalorder %s1955_s17, %s1955_s17 }
  0x25   :  { %p1962_p6 = por %p1961_p5, %p1960_p4 }
  0x27   :  { %p1963_p7 = pnand %p1962_p6, %p1956_p3 }
  0x29   :  { %1966 = shalt.err (!%p1963_p7)
}
  0x2a   :  { %24 = dma.hbm_to_vmem [thread:$0]  %s2377_s0, 1024, %s19_s24, [#allocation3], %s2019_s6, %s2019_s6, %s2020_s7  }
  0x2b   :  { %s2021_s20 = smov [#allocation7]   ;;  %s1967_s25 = scalar_lea.hbm %s2379_s2, 4608 }
  0x2c   :  { %s48_s21 = sshll.u32 %s2021_s20, 4  ;;  %p1968_p8 = scmp.ne.s32.totalorder %s2379_s2, %s1967_s25  ;;  %s49_s21 = int_to_ptr.vmem [resolvable:$true] %s48_s21 }
  0x2d   :  { %p1971_p9 = scmp.lt.u32.totalorder %s1967_s25, %s2379_s2 }
  0x2f   :  { %p1973_p10 = pnand %p1971_p9, %p1968_p8 }
  0x31   :  { %1976 = shalt.err (!%p1973_p10)
}
  0x32   :  { %s1977_s30 = scalar_lea.vmem %s49_s21, 4608  ;;  %p1982_p12 = scmp.lt.s32.totalorder %s49_s21, %s49_s21 }
  0x33   :  { %p1978_p11 = scmp.ne.s32.totalorder %s49_s21, %s1977_s30  ;;  %p1983_p13 = scmp.lt.s32.totalorder %s1977_s30, %s1977_s30 }
  0x35   :  { %p1984_p0 = por %p1983_p13, %p1982_p12 }
  0x37   :  { %p1985_p1 = pnand %p1984_p0, %p1978_p11 }
  0x39   :  { %1988 = shalt.err (!%p1985_p1)
}
  0x3a   :  { %54 = dma.hbm_to_vmem [thread:$0]  %s2379_s2, 4608, %s49_s21, [#allocation6], %s2019_s6, %s2019_s6, %s2020_s7  }
  0x3b   :  { %2011 = dma.done.wait [#allocation3], 1024  }
  0x3c   :  { %2012 = vsyncadd [#allocation3], 4294966272 }
  0x3d   :  { %2013 = dma.done.wait [#allocation6], 4864  }
  0x3e   :  { %2014 = vsyncadd [#allocation6], 4294962432  ;;  %v1879_v0 = vld [vmem:[#allocation7 + $0x60] sm:$0xff]   ;;  %v1881_v2 = vld [vmem:[#allocation7 + $0x68] sm:$0xff]   ;;  %vm136_vm0 = vcmask 1043456   ;;  %vm170_vm1 = vcmask 523264  }
  0x3f   :  { %v1880_v1 = vld [vmem:[#allocation7 + $0x80] sm:$0xff]   ;;  %1657 = vmatprep.subr.bf16.mxu1 %v1879_v0  ;;  %v1882_v3 = vld [vmem:[#allocation7 + $0x88] sm:$0xff]   ;;  %v1883_v4 = vld [vmem:[#allocation7 + $0x70] sm:$0xff]   ;;  %vm458_vm2 = vsmask.f32 3328  ;;  %vm978_vm5 = vcmask 1042432  }
  0x40   :  { %1721 = vmatprep.subr.bf16.mxu0 %v1880_v1  ;;  %1658 = vmatpush3.bf16.msra.mxu1 %v1879_v0  ;;  %v1884_v5 = vld [vmem:[#allocation7 + $0x90] sm:$0xff]   ;;  %v1885_v6 = vld [vmem:[#allocation7 + $0x78] sm:$0xff]   ;;  %v2102_v9 = vld [vmem:[#allocation2 + $0x10] sm:$0xf]  ;;  %vm459_vm3 = vsmask.f32 7440 }
  0x41   :  { %1722 = vmatpush3.bf16.msra.mxu0 %v1880_v1  ;;  %1659 = vmatprep.subr.bf16.mxu1 %v1881_v2  ;;  %v2098_v7 = vld [vmem:[#allocation2] sm:$0xf]  ;;  %v2100_v8 = vld [vmem:[#allocation2 + $0x8] sm:$0xf]  ;;  %v2104_v11 = vld [vmem:[#allocation2 + $0x18] sm:$0xf] }
  0x42   :  { %1723 = vmatprep.subr.bf16.mxu0 %v1882_v3  ;;  %v1886_v10 = vld [vmem:[#allocation7 + $0x98] sm:$0xff]   ;;  %v2108_v12 = vcombine.low %v2098_v7, %v2100_v8  ;;  %v462_v13 = vshrl.u32 %v2098_v7, 16  ;;  %v465_v14 = vshll.u32 %v2098_v7, 16  ;;  %v476_v15 = vshrl.u32 %v2100_v8, 16  ;;  %v2119_v19 = vld [vmem:[#allocation2 + $0x4] sm:$0x1]  ;;  %vm2143_vm4 = vmor %vm458_vm2, %vm459_vm3 }
  0x43   :  { %v2115_v16 = vcombine.low %v2102_v9, %v2104_v11  ;;  %v479_v17 = vshll.u32 %v2100_v8, 16  ;;  %v490_v18 = vshrl.u32 %v2102_v9, 16  ;;  %v493_v21 = vshll.u32 %v2102_v9, 16  ;;  %v2123_v22 = vld [vmem:[#allocation2 + $0xc] sm:$0x1]  ;;  %v2130_v27 = vld [vmem:[#allocation7] sm:$0xff]  }
  0x44   :  { %1660 = vmatpush3.bf16.msra.mxu1 %v1881_v2  ;;  %v137_v20 = vrot.slane %v2108_v12, 4  ;;  %v504_v24 = vshrl.u32 %v2104_v11, 16  ;;  %v507_v25 = vshll.u32 %v2104_v11, 16  ;;  %v2128_v26 = vld [vmem:[#allocation2 + $0x14] sm:$0x1]  ;;  %v464_v28 = vrot.slane %v462_v13, 4 }
  0x45   :  { %1724 = vmatpush3.bf16.msra.mxu0 %v1882_v3  ;;  %1661 = vmatprep.subr.bf16.mxu1 %v1883_v4  ;;  %v138_v23 = vrot.slane %v2115_v16, 4  ;;  %v467_v29 = vrot.slane %v465_v14, 5  ;;  %v471_v30 = vshll.u32 %v2119_v19, 16  ;;  %v478_v31 = vrot.slane %v476_v15, 4  ;;  %v2133_v32 = vld [vmem:[#allocation7 + $0xe0] sm:$0xff]   ;;  %v1892_v14 = vld [vmem:[#allocation7 + $0x8] sm:$0xff]  }
  0x46   :  { %1725 = vmatprep.subr.bf16.mxu0 %v1884_v5  ;;  %v2136_v34 = vld [vmem:[#allocation2 + $0x1c] sm:$0x1]  ;;  %v481_v35 = vrot.slane %v479_v17, 5  ;;  %v485_v36 = vshll.u32 %v2123_v22, 16  ;;  %v492_v37 = vrot.slane %v490_v18, 4  ;;  %v495_v40 = vrot.slane %v493_v21, 5 }
  0x47   :  { %v139_v33 = vsel %vm136_vm0, %v137_v20, %v138_v23  ;;  %v468_v38 = vor.u32 %v467_v29, %v464_v28  ;;  %v473_v39 = vrot.slane %v471_v30, 5  ;;  %v499_v41 = vshll.u32 %v2128_v26, 16  ;;  %v2149_v51 = vld [vmem:[#allocation2 + $0x20] sm:$0xf]  ;;  %v2152_v54 = vld [vmem:[#allocation2 + $0x28] sm:$0xf] }
  0x48   :  { %1662 = vmatpush3.bf16.msra.mxu1 %v1883_v4  ;;  %1665 = vmatprep.mubr.msk.bf16.mxu1 %vm170_vm1, %v139_v33  ;;  %v482_v43 = vor.u32 %v481_v35, %v478_v31  ;;  %v487_v44 = vrot.slane %v485_v36, 5  ;;  %v506_v45 = vrot.slane %v504_v24, 4  ;;  %v509_v46 = vrot.slane %v507_v25, 5  ;;  %v2154_v55 = vld [vmem:[#allocation2 + $0x24] sm:$0x1]  ;;  %v1906_v42 = vld [vmem:[#allocation7 + $0xd8] sm:$0xff]  }
  0x49   :  { %1726 = vmatpush3.bf16.msra.mxu0 %v1884_v5  ;;  %1663 = vmatprep.subr.bf16.mxu1 %v1885_v6  ;;  %v469_v47 = vrot.slane %v468_v38, 4  ;;  %v496_v48 = vor.u32 %v495_v40, %v492_v37  ;;  %v501_v49 = vrot.slane %v499_v41, 5  ;;  %v513_v50 = vshll.u32 %v2136_v34, 16  ;;  %v2162_v60 = vld [vmem:[#allocation2 + $0x2c] sm:$0x1] }
  0x4a   :  { %1727 = vmatprep.subr.bf16.mxu0 %v1886_v10  ;;  %v483_v52 = vrot.slane %v482_v43, 4  ;;  %v510_v53 = vor.u32 %v509_v46, %v506_v45  ;;  %v2160_v59 = vcombine.low %v2149_v51, %v2152_v54  ;;  %v518_v63 = vshrl.u32 %v2149_v51, 16  ;;  %v2182_v21 = vld [vmem:[#allocation2 + $0x30] sm:$0xf]  ;;  %v2184_v24 = vld [vmem:[#allocation2 + $0x38] sm:$0xf] }
  0x4b   :  { %v474_v56 = vsel %vm2143_vm4, %v469_v47, %v473_v39  ;;  %v497_v57 = vrot.slane %v496_v48, 4  ;;  %v515_v58 = vrot.slane %v513_v50, 5  ;;  %v521_v0 = vshll.u32 %v2149_v51, 16  ;;  %v2188_v31 = vld [vmem:[#allocation2 + $0x34] sm:$0x1] }
  0x4c   :  { %1664 = vmatpush3.bf16.msra.mxu1 %v1885_v6  ;;  %v488_v61 = vsel %vm2143_vm4, %v483_v52, %v487_v44  ;;  %v511_v62 = vrot.slane %v510_v53, 4  ;;  %v140_v3 = vrot.slane %v2160_v59, 4  ;;  %v532_v4 = vshrl.u32 %v2152_v54, 16  ;;  %v2197_v37 = vld [vmem:[#allocation2 + $0x3c] sm:$0x1]  ;;  %v1896_v44 = vld [vmem:[#allocation7 + $0x10] sm:$0xff]  }
  0x4d   :  { %1728 = vmatpush3.bf16.msra.mxu0 %v1886_v10  ;;  %1673 = vmatprep.subr.bf16.mxu1 %v2130_v27  ;;  %v502_v1 = vsel %vm2143_vm4, %v497_v57, %v501_v49  ;;  %v2170_v2 = vcombine.low %v474_v56, %v488_v61  ;;  %v535_v6 = vshll.u32 %v2152_v54, 16  ;;  %v520_v10 = vrot.slane %v518_v63, 4  ;;  %v2200_v43 = vld [vmem:[#allocation5] sm:$0xf]  ;;  %v2206_v48 = vld [vmem:[#allocation5 + $0x8] sm:$0xf] }
  0x4e   :  { %1737 = vmatprep.subr.bf16.mxu0 %v2133_v32  ;;  %v516_v5 = vsel %vm2143_vm4, %v511_v62, %v515_v58  ;;  %v523_v13 = vrot.slane %v521_v0, 5  ;;  %v141_v18 = vsel %vm136_vm0, %v138_v23, %v140_v3  ;;  %v527_v20 = vshll.u32 %v2154_v55, 16 }
  0x4f   :  { %v2177_v15 = vcombine.low %v502_v1, %v516_v5  ;;  %v743_v17 = vrot.slane %v2170_v2, 4  ;;  %1666 = vmatmul.mubr.msk.bf16.vlgmr.msra.gmra.mrb[0].mxu1 %vm170_vm1, %v141_v18  ;;  %v534_v28 = vrot.slane %v532_v4, 4  ;;  %v537_v29 = vrot.slane %v535_v6, 5  ;;  %v2221_v4 = vld [vmem:[#allocation5 + $0x4] sm:$0x1] }
  0x50   :  { %v524_v25 = vor.u32 %v523_v13, %v520_v10  ;;  %v541_v30 = vshll.u32 %v2162_v60, 16  ;;  %v529_v35 = vrot.slane %v527_v20, 5  ;;  %1674 = vmatpush3.bf16.msra.mxu1 %v2130_v27  ;;  %v2194_v23 = vcombine.low %v2182_v21, %v2184_v24 }
  0x51   :  { %v744_v33 = vrot.slane %v2177_v15, 4  ;;  %v546_v36 = vshrl.u32 %v2182_v21, 16  ;;  %v538_v39 = vor.u32 %v537_v29, %v534_v28  ;;  %1675 = vmatprep.subr.bf16.mxu1 %v1892_v14  ;;  %v549_v41 = vshll.u32 %v2182_v21, 16  ;;  %v1900_v29 = vld [vmem:[#allocation7 + $0xc0] sm:$0xff]  }
  0x52   :  { %v525_v38 = vrot.slane %v524_v25, 4  ;;  %v543_v40 = vrot.slane %v541_v30, 5  ;;  %v142_v27 = vrot.slane %v2194_v23, 4  ;;  %v560_v46 = vshrl.u32 %v2184_v24, 16 }
  0x53   :  { %v745_v45 = vsel %vm136_vm0, %v743_v17, %v744_v33  ;;  %v563_v47 = vshll.u32 %v2184_v24, 16  ;;  %v539_v50 = vrot.slane %v538_v39, 4  ;;  %v548_v52 = vrot.slane %v546_v36, 4  ;;  %v1893_v17 = vld [vmem:[#allocation7 + $0xe8] sm:$0xff]  }
  0x54   :  { %1729 = vmatprep.mubr.msk.bf16.mxu0 %vm170_vm1, %v745_v45  ;;  %v530_v49 = vsel %vm2143_vm4, %v525_v38, %v529_v35  ;;  %v551_v53 = vrot.slane %v549_v41, 5  ;;  %1676 = vmatpush3.bf16.msra.mxu1 %v1892_v14  ;;  %v143_v56 = vsel %vm136_vm0, %v140_v3, %v142_v27  ;;  %v555_v57 = vshll.u32 %v2188_v31, 16  ;;  %v1898_v3 = vld [vmem:[#allocation7 + $0x18] sm:$0xff]  }
  0x55   :  { %v562_v58 = vrot.slane %v560_v46, 4  ;;  %v565_v61 = vrot.slane %v563_v47, 5  ;;  %v544_v62 = vsel %vm2143_vm4, %v539_v50, %v543_v40  ;;  %1669 = vmatprep.mubr.msk.bf16.mxu1 %vm170_vm1, %v143_v56  ;;  %v569_v0 = vshll.u32 %v2197_v37, 16  ;;  %1677 = vmatprep.subr.bf16.mxu1 %v1896_v44  ;;  %v2226_v14 = vld [vmem:[#allocation5 + $0xc] sm:$0x1] }
  0x56   :  { %v552_v63 = vor.u32 %v551_v53, %v548_v52  ;;  %v2219_v1 = vcombine.low %v2200_v43, %v2206_v48  ;;  %v2223_v5 = vcombine.low %v530_v49, %v544_v62  ;;  %v557_v6 = vrot.slane %v555_v57, 5  ;;  %v1897_v62 = vld [vmem:[#allocation7 + $0xf0] sm:$0xff]  }
  0x57   :  { %v566_v10 = vor.u32 %v565_v61, %v562_v58  ;;  %v574_v13 = vshrl.u32 %v2200_v43, 16  ;;  %v571_v20 = vrot.slane %v569_v0, 5  ;;  %v577_v28 = vshll.u32 %v2200_v43, 16 }
  0x58   :  { %v553_v18 = vrot.slane %v552_v63, 4  ;;  %v144_v25 = vrot.slane %v2219_v1, 4  ;;  %v746_v30 = vrot.slane %v2223_v5, 4  ;;  %v588_v36 = vshrl.u32 %v2206_v48, 16  ;;  %1678 = vmatpush3.bf16.msra.mxu1 %v1896_v44 }
  0x59   :  { %v567_v35 = vrot.slane %v566_v10, 4  ;;  %v591_v38 = vshll.u32 %v2206_v48, 16  ;;  %v576_v41 = vrot.slane %v574_v13, 4  ;;  %v579_v45 = vrot.slane %v577_v28, 5  ;;  %1679 = vmatprep.subr.bf16.mxu1 %v1898_v3  ;;  %v1902_v10 = vld [vmem:[#allocation7 + $0xc8] sm:$0xff]  }
  0x5a   :  { %v558_v39 = vsel %vm2143_vm4, %v553_v18, %v557_v6  ;;  %v145_v40 = vsel %vm136_vm0, %v142_v27, %v144_v25  ;;  %v747_v46 = vsel %vm136_vm0, %v744_v33, %v746_v30  ;;  %v583_v49 = vshll.u32 %v2221_v4, 16  ;;  %v1904_v18 = vld [vmem:[#allocation7 + $0xd0] sm:$0xff]   ;;  %v1903_v25 = vld [vmem:[#allocation7 + $0x48] sm:$0xff]  }
  0x5b   :  { %v572_v47 = vsel %vm2143_vm4, %v567_v35, %v571_v20  ;;  %1670 = vmatmul.mubr.msk.bf16.gmra.mrb[4].mxu1 %vm170_vm1, %v145_v40  ;;  %v590_v50 = vrot.slane %v588_v36, 4  ;;  %1730 = vmatmul.mubr.msk.bf16.vlgmr.msra.gmra.mrb[0].mxu0 %vm170_vm1, %v747_v46  ;;  %v580_v52 = vor.u32 %v579_v45, %v576_v41  ;;  %v593_v53 = vrot.slane %v591_v38, 5  ;;  %v1907_v46 = vld [vmem:[#allocation7 + $0x58] sm:$0xff]  }
  0x5c   :  { %v2242_v44 = vcombine.low %v558_v39, %v572_v47  ;;  %v597_v27 = vshll.u32 %v2226_v14, 16  ;;  %1681 = vmatprep.mubr.msk.bf16.mxu1 %vm170_vm1, %v2108_v12  ;;  %1738 = vmatpush3.bf16.msra.mxu0 %v2133_v32  ;;  %v585_v33 = vrot.slane %v583_v49, 5  ;;  %v1899_v32 = vld [vmem:[#allocation7 + $0xf8] sm:$0xff]   ;;  %vm979_vm6 = vcmask 1046532  }
  0x5d   :  { %1680 = vmatpush3.bf16.msra.mxu1 %v1898_v3  ;;  %1739 = vmatprep.subr.bf16.mxu0 %v1893_v17  ;;  %v581_v57 = vrot.slane %v580_v52, 4  ;;  %v594_v58 = vor.u32 %v593_v53, %v590_v50  ;;  %v1521_v28 = vrot.slane %v2098_v7, 9  ;;  %v1522_v35 = vrot.slane %v2100_v8, 9  ;;  %vm2271_vm7 = vmor %vm978_vm5, %vm979_vm6  ;;  %v1910_v7 = vld [vmem:[#allocation7 + $0x28] sm:$0xff]  }
  0x5e   :  { %v748_v56 = vrot.slane %v2242_v44, 4  ;;  %v599_v61 = vrot.slane %v597_v27, 5  ;;  %1689 = vmatprep.subr.bf16.mxu1 %v1900_v29  ;;  %v987_v36 = vrot.slane %v2123_v22, 5  ;;  %v1523_v22 = vrot.slane %v2102_v9, 9 }
  0x5f   :  { %v586_v0 = vsel %vm2143_vm4, %v581_v57, %v585_v33  ;;  %v595_v6 = vrot.slane %v594_v58, 4  ;;  %v1524_v39 = vrot.slane %v2104_v11, 9  ;;  %v991_v40 = vrot.slane %v2128_v26, 5  ;;  %v1913_v57 = vld [vmem:[#allocation7 + $0xb0] sm:$0xff]  }
  0x60   :  { %v749_v63 = vsel %vm136_vm0, %v746_v30, %v748_v56  ;;  %1740 = vmatpush3.bf16.msra.mxu0 %v1893_v17  ;;  %v1901_v17 = vld [vmem:[#allocation7 + $0x40] sm:$0xff]   ;;  %v995_v41 = vrot.slane %v2136_v34, 5  ;;  %v1525_v47 = vrot.slane %v2149_v51, 9  ;;  %v1526_v9 = vrot.slane %v2152_v54, 9  ;;  %v1914_v34 = vld [vmem:[#allocation7 + $0x38] sm:$0xff]  }
  0x61   :  { %1733 = vmatprep.mubr.msk.bf16.mxu0 %vm170_vm1, %v749_v63  ;;  %v600_v12 = vsel %vm2143_vm4, %v595_v6, %v599_v61  ;;  %1741 = vmatprep.subr.bf16.mxu0 %v1897_v62  ;;  %v1908_v30 = vld [vmem:[#allocation7 + $0x20] sm:$0xff]   ;;  %v1003_v49 = vrot.slane %v2162_v60, 5  ;;  %v992_v11 = vsel %vm2271_vm7, %v1523_v22, %v991_v40  ;;  %v1527_v50 = vrot.slane %v2182_v21, 9  ;;  %v1560_v40 = vld [vmem:[%s2380_s3] ss:$0 sm:$0xff]  ;;  %s2022_s3 = smov [#allocation8]  }
  0x62   :  { %v1496_v3 = vcombine.low %v586_v0, %v600_v12  ;;  %v996_v26 = vsel %vm2271_vm7, %v1524_v39, %v995_v41  ;;  %v1909_v51 = vld [vmem:[#allocation7 + $0xa0] sm:$0xff]   ;;  %v1007_v53 = vrot.slane %v2188_v31, 5  ;;  %v1528_v27 = vrot.slane %v2184_v24, 9  ;;  %v1919_v12 = vld [vmem:[#allocation7 + $0x118] sm:$0xff]  }
  0x63   :  { %1682 = vmatmul.mubr.msk.bf16.vlgmr.msra.gmra.mrb[0].mxu1 %vm170_vm1, %v2115_v16  ;;  %v2307_v60 = vcombine.low %v992_v11, %v996_v26  ;;  %v1011_v33 = vrot.slane %v2197_v37, 5  ;;  %v1917_v37 = vld [vmem:[#allocation7 + $0x108] sm:$0xff]   ;;  %v1529_v63 = vrot.slane %v2200_v43, 9  ;;  %v1017_v0 = vrot.slane %v2221_v4, 5 }
  0x64   :  { %1690 = vmatpush3.bf16.msra.mxu1 %v1900_v29  ;;  %1685 = vmatprep.mubr.msk.bf16.mxu1 %vm170_vm1, %v2160_v59  ;;  %v750_v13 = vrot.slane %v1496_v3, 4  ;;  %v983_v29 = vrot.slane %v2119_v19, 5  ;;  %v988_v19 = vsel %vm2271_vm7, %v1522_v35, %v987_v36  ;;  %v1530_v6 = vrot.slane %v2206_v48, 9 }
  0x65   :  { %1742 = vmatpush3.bf16.msra.mxu0 %v1897_v62  ;;  %1691 = vmatprep.subr.bf16.mxu1 %v1902_v10  ;;  %v1012_v21 = vsel %vm2271_vm7, %v1528_v27, %v1011_v33  ;;  %v1166_v31 = vrot.slane %v2307_v60, 4  ;;  %v1915_v62 = vld [vmem:[#allocation7 + $0xb8] sm:$0xff]   ;;  %v1018_v43 = vsel %vm2271_vm7, %v1529_v63, %v1017_v0 }
  0x66   :  { %1743 = vmatprep.subr.bf16.mxu0 %v1899_v32  ;;  %v751_v20 = vsel %vm136_vm0, %v748_v56, %v750_v13  ;;  %v984_v8 = vsel %vm2271_vm7, %v1521_v28, %v983_v29  ;;  %v1916_v56 = vld [vmem:[#allocation7 + $0x100] sm:$0xff]  }
  0x67   :  { %1734 = vmatmul.mubr.msk.bf16.gmra.mrb[4].mxu0 %vm170_vm1, %v751_v20  ;;  %v1531_v45 = vcombine.low %v984_v8, %v988_v19 }
  0x68   :  { %1692 = vmatpush3.bf16.msra.mxu1 %v1902_v10  ;;  %1745 = vmatprep.mubr.msk.bf16.mxu0 %vm170_vm1, %v2177_v15  ;;  %v1021_v10 = vrot.slane %v2226_v14, 5 }
  0x69   :  { %1744 = vmatpush3.bf16.msra.mxu0 %v1899_v32  ;;  %1693 = vmatprep.subr.bf16.mxu1 %v1904_v18  ;;  %v1165_v24 = vrot.slane %v1531_v45, 4 }
  0x6a   :  { %1753 = vmatprep.subr.bf16.mxu0 %v1901_v17  ;;  %v1022_v48 = vsel %vm2271_vm7, %v1530_v6, %v1021_v10 }
  0x6b   :  { %1686 = vmatmul.mubr.msk.bf16.gmra.mrb[4].mxu1 %vm170_vm1, %v2194_v23  ;;  %v1167_v61 = vsel %vm136_vm0, %v1165_v24, %v1166_v31  ;;  %v1535_v14 = vcombine.low %v1018_v43, %v1022_v48 }
  0x6c   :  { %1694 = vmatpush3.bf16.msra.mxu1 %v1904_v18  ;;  %1697 = vmatprep.mubr.msk.bf16.mxu1 %vm170_vm1, %v2115_v16  ;;  %v1905_v16 = vld [vmem:[#allocation7 + $0x50] sm:$0xff]  }
  0x6d   :  { %1695 = vmatprep.subr.bf16.mxu1 %v1906_v42  ;;  %v1172_v13 = vrot.slane %v1535_v14, 4 }
  0x6f   :  { %1746 = vmatmul.mubr.msk.bf16.vlgmr.msra.gmra.mrb[0].mxu0 %vm170_vm1, %v2223_v5 }
  0x70   :  { %1696 = vmatpush3.bf16.msra.mxu1 %v1906_v42  ;;  %1754 = vmatpush3.bf16.msra.mxu0 %v1901_v17 }
  0x71   :  { %1749 = vmatprep.mubr.msk.bf16.mxu0 %vm170_vm1, %v2242_v44  ;;  %1755 = vmatprep.subr.bf16.mxu0 %v1903_v25 }
  0x72   :  { %1705 = vmatprep.subr.bf16.mxu1 %v1908_v30 }
  0x73   :  { %1698 = vmatmul.mubr.msk.bf16.vlgmr.msra.gmra.mrb[0].mxu1 %vm170_vm1, %v2160_v59  ;;  %v999_v59 = vrot.slane %v2154_v55, 5  ;;  %v1004_v55 = vsel %vm2271_vm7, %v1526_v9, %v1003_v49 }
  0x74   :  { %1706 = vmatpush3.bf16.msra.mxu1 %v1908_v30  ;;  %1701 = vmatprep.mubr.msk.bf16.mxu1 %vm170_vm1, %v2194_v23  ;;  %v1912_v23 = vld [vmem:[#allocation7 + $0x30] sm:$0xff]  }
  0x75   :  { %1756 = vmatpush3.bf16.msra.mxu0 %v1903_v25  ;;  %1707 = vmatprep.subr.bf16.mxu1 %v1910_v7  ;;  %v1000_v54 = vsel %vm2271_vm7, %v1525_v47, %v999_v59  ;;  %v1561_v59 = vld [vmem:[%s2381_s4] ss:$0 sm:$0xff]  ;;  %s1449_s4 = sshll.u32 %s2022_s3, 4  ;;  %s1450_s4 = int_to_ptr.vmem [resolvable:$true] %s1449_s4 }
  0x76   :  { %1757 = vmatprep.subr.bf16.mxu0 %v1905_v16  ;;  %v2312_v52 = vcombine.low %v1000_v54, %v1004_v55  ;;  %s1989_s10 = scalar_lea.vmem %s1450_s4, 512  ;;  %p1994_p3 = scmp.lt.s32.totalorder %s1450_s4, %s1450_s4 }
  0x77   :  { %1750 = vmatmul.mubr.msk.bf16.gmra.mrb[4].mxu0 %vm170_vm1, %v1496_v3  ;;  %p1990_p2 = scmp.ne.s32.totalorder %s1450_s4, %s1989_s10  ;;  %p1995_p4 = scmp.lt.s32.totalorder %s1989_s10, %s1989_s10 }
  0x78   :  { %1708 = vmatpush3.bf16.msra.mxu1 %v1910_v7  ;;  %1761 = vmatprep.mubr.msk.bf16.mxu0 %vm170_vm1, %v1531_v45 }
  0x79   :  { %1758 = vmatpush3.bf16.msra.mxu0 %v1905_v16  ;;  %1709 = vmatprep.subr.bf16.mxu1 %v1912_v23  ;;  %p1996_p5 = por %p1995_p4, %p1994_p3 }
  0x7a   :  { %1759 = vmatprep.subr.bf16.mxu0 %v1907_v46 }
  0x7b   :  { %1702 = vmatmul.mubr.msk.bf16.gmra.mrb[4].mxu1 %vm170_vm1, %v2219_v1  ;;  %v1911_v1 = vld [vmem:[#allocation7 + $0xa8] sm:$0xff]   ;;  %p1997_p6 = pnand %p1996_p5, %p1990_p2 }
  0x7c   :  { %1710 = vmatpush3.bf16.msra.mxu1 %v1912_v23  ;;  %1713 = vmatprep.mubr.msk.bf16.mxu1 %vm170_vm1, %v2170_v2  ;;  %v1008_v2 = vsel %vm2271_vm7, %v1527_v50, %v1007_v53 }
  0x7d   :  { %1760 = vmatpush3.bf16.msra.mxu0 %v1907_v46  ;;  %1711 = vmatprep.subr.bf16.mxu1 %v1914_v34  ;;  %v1534_v58 = vcombine.low %v1008_v2, %v1012_v21 }
  0x7e   :  { %1769 = vmatprep.subr.bf16.mxu0 %v1909_v51 }
  0x7f   :  { %v1170_v32 = vrot.slane %v1534_v58, 4 }
  0x80   :  { %1762 = vmatmul.mubr.msk.bf16.vlgmr.msra.gmra.mrb[0].mxu0 %vm170_vm1, %v2307_v60  ;;  %1712 = vmatpush3.bf16.msra.mxu1 %v1914_v34 }
  0x81   :  { %1770 = vmatpush3.bf16.msra.mxu0 %v1909_v51  ;;  %1765 = vmatprep.mubr.msk.bf16.mxu0 %vm170_vm1, %v2312_v52 }
  0x82   :  { %1771 = vmatprep.subr.bf16.mxu0 %v1911_v1  ;;  %1801 = vmatprep.subr.bf16.mxu1 %v1916_v56 }
  0x83   :  { %1714 = vmatmul.mubr.msk.bf16.vlgmr.msra.gmra.mrb[0].mxu1 %vm170_vm1, %v2177_v15  ;;  %v1918_v15 = vld [vmem:[#allocation7 + $0x110] sm:$0xff]  }
  0x84   :  { %1805 = vmatpush3.bf16.msra.mxu1 %v1916_v56  ;;  %1717 = vmatprep.mubr.msk.bf16.mxu1 %vm170_vm1, %v2223_v5  ;;  %v1168_v5 = vrot.slane %v2312_v52, 4 }
  0x85   :  { %1772 = vmatpush3.bf16.msra.mxu0 %v1911_v1  ;;  %1802 = vmatprep.subr.bf16.mxu1 %v1917_v37 }
  0x86   :  { %1773 = vmatprep.subr.bf16.mxu0 %v1913_v57  ;;  %v1169_v4 = vsel %vm136_vm0, %v1166_v31, %v1168_v5  ;;  %v1171_v3 = vsel %vm136_vm0, %v1168_v5, %v1170_v32 }
  0x88   :  { %1766 = vmatmul.mubr.msk.bf16.gmra.mrb[4].mxu0 %vm170_vm1, %v1534_v58  ;;  %1806 = vmatpush3.bf16.msra.mxu1 %v1917_v37 }
  0x89   :  { %1774 = vmatpush3.bf16.msra.mxu0 %v1913_v57  ;;  %1777 = vmatprep.mubr.msk.bf16.mxu0 %vm170_vm1, %v1167_v61 }
  0x8a   :  { %1775 = vmatprep.subr.bf16.mxu0 %v1915_v62  ;;  %1803 = vmatprep.subr.bf16.mxu1 %v1918_v15 }
  0x8b   :  { %1718 = vmatmul.mubr.msk.bf16.gmra.mrb[4].mxu1 %vm170_vm1, %v2242_v44  ;;  %v1173_v44 = vsel %vm136_vm0, %v1170_v32, %v1172_v13 }
  0x8c   :  { %1807 = vmatpush3.bf16.msra.mxu1 %v1918_v15  ;;  %1797 = vmatprep.mubr.msk.bf16.mxu1 %vm170_vm1, %v1534_v58 }
  0x8d   :  { %1776 = vmatpush3.bf16.msra.mxu0 %v1915_v62  ;;  %1804 = vmatprep.subr.bf16.mxu1 %v1919_v12 }
  0x8e   :  { %1785 = vmatprep.subr.bf16.mxu0 %v1916_v56 }
  0x90   :  { %1778 = vmatmul.mubr.msk.bf16.vlgmr.msra.gmra.mrb[0].mxu0 %vm170_vm1, %v1169_v4  ;;  %1808 = vmatpush3.bf16.msra.mxu1 %v1919_v12 }
  0x91   :  { %1786 = vmatpush3.bf16.msra.mxu0 %v1916_v56  ;;  %1781 = vmatprep.mubr.msk.bf16.mxu0 %vm170_vm1, %v1171_v3 }
  0x92   :  { %1787 = vmatprep.subr.bf16.mxu0 %v1917_v37 }
  0x93   :  { %1798 = vmatmul.mubr.msk.bf16.vlgmr.msra.gmra.mrb[8].mxu1 %vm170_vm1, %v1535_v14 }
  0x95   :  { %1788 = vmatpush3.bf16.msra.mxu0 %v1917_v37 }
  0x96   :  { %1789 = vmatprep.subr.bf16.mxu0 %v1918_v15 }
  0x98   :  { %1782 = vmatmul.mubr.msk.bf16.gmra.mrb[4].mxu0 %vm170_vm1, %v1173_v44 }
  0x99   :  { %1790 = vmatpush3.bf16.msra.mxu0 %v1918_v15  ;;  %1793 = vmatprep.mubr.msk.bf16.mxu0 %vm170_vm1, %v2307_v60 }
  0x9a   :  { %1791 = vmatprep.subr.bf16.mxu0 %v1919_v12 }
  0x9d   :  { %1792 = vmatpush3.bf16.msra.mxu0 %v1919_v12 }
  0xa0   :  { %1794 = vmatmul.mubr.msk.bf16.vlgmr.msra.gmra.mrb[0].mxu0 %vm170_vm1, %v2312_v52 }
 0x156   :  { %v1715_v17 = vpop.f32.mrb[0].mxu1 }
 0x157   :  { %v695_v18 = vpop.f32.mrb[1].mxu1 }
 0x158   :  { %v1716_v20 = vpop.f32.mrb[2].mxu1 }
 0x159   :  { %v698_v42 = vpop.f32.mrb[3].mxu1 }
 0x15e   :  { %v1719_v25 = vpop.f32.mrb[4].mxu1 }
 0x15f   :  { %v711_v28 = vpop.f32.mrb[5].mxu1 }
 0x160   :  { %v1720_v29 = vpop.f32.mrb[6].mxu1 }
 0x161   :  { %v714_v30 = vpop.f32.mrb[7].mxu1 }
 0x166   :  { %v1799_v35 = vpop.f32.mrb[8].mxu1 }
 0x167   :  { %v1369_v36 = vpop.f32.mrb[9].mxu1 }
 0x168   :  { %v1800_v38 = vpop.f32.mrb[10].mxu1 }
 0x169   :  { %v1372_v7 = vpop.f32.mrb[11].mxu1 }
 0x16b   :  { %v1783_v16 = vpop.f32.mrb[4].mxu0 }
 0x16c   :  { %v1813_v8 = vadd.f32 %v1783_v16, %v1719_v25  ;;  %v1260_v19 = vpop.f32.mrb[5].mxu0 }
 0x16d   :  { %v1815_v22 = vadd.f32 %v1260_v19, %v711_v28  ;;  %v1784_v39 = vpop.f32.mrb[6].mxu0 }
 0x16e   :  { %v1817_v41 = vadd.f32 %v1784_v39, %v1720_v29  ;;  %v1263_v45 = vpop.f32.mrb[7].mxu0  ;;  %v1814_v46 = vadd.f32 %v1813_v8, %v1799_v35 }
 0x16f   :  { %v1819_v47 = vadd.f32 %v1263_v45, %v714_v30  ;;  %v1816_v9 = vadd.f32 %v1815_v22, %v1369_v36 }
 0x170   :  { %v1404_v49 = vmul.f32 %v1814_v46, %v1560_v40  ;;  %v1818_v23 = vadd.f32 %v1817_v41, %v1800_v38 }
 0x171   :  { %v1402_v11 = vmul.f32 %v1816_v9, %v1560_v40  ;;  %v1820_v26 = vadd.f32 %v1819_v47, %v1372_v7 }
 0x172   :  { %v1418_v34 = vadd.f32 %v1561_v59, %v1404_v49  ;;  %v1405_v51 = vmul.f32 %v1818_v23, %v1560_v40 }
 0x173   :  { %v1795_v54 = vpop.f32.mrb[0].mxu0  ;;  %v1416_v55 = vadd.f32 %v1561_v59, %v1402_v11  ;;  %v1403_v60 = vmul.f32 %v1820_v26, %v1560_v40 }
 0x174   :  { %v1809_v50 = vadd.f32 %v1795_v54, %v1715_v17  ;;  %v1353_v52 = vpop.f32.mrb[1].mxu0  ;;  %v1419_v53 = vadd.f32 %v1561_v59, %v1405_v51  ;;  %v1426_v2 = vmax.f32 %v1418_v34, 0.0 }
 0x175   :  { %v1810_v27 = vadd.f32 %v1353_v52, %v695_v18  ;;  %v1796_v33 = vpop.f32.mrb[2].mxu0  ;;  %v1417_v1 = vadd.f32 %v1561_v59, %v1403_v60  ;;  %v1424_v57 = vmax.f32 %v1416_v55, 0.0 }
 0x176   :  { %v1400_v56 = vmul.f32 %v1809_v50, %v1560_v40  ;;  %v1811_v21 = vadd.f32 %v1796_v33, %v1716_v20  ;;  %v1427_v24 = vmax.f32 %v1419_v53, 0.0  ;;  %v1356_v31 = vpop.f32.mrb[3].mxu0 }
 0x177   :  { %v1398_v37 = vmul.f32 %v1810_v27, %v1560_v40  ;;  %v1812_v58 = vadd.f32 %v1356_v31, %v698_v42  ;;  %v1425_v61 = vmax.f32 %v1417_v1, 0.0 }
 0x178   :  { %v1414_v62 = vadd.f32 %v1561_v59, %v1400_v56  ;;  %v1401_v63 = vmul.f32 %v1811_v21, %v1560_v40  ;;  %v1580_v0 = vpack.c.bf16 %v1427_v24, %v1426_v2 }
 0x179   :  { %v1412_v6 = vadd.f32 %v1561_v59, %v1398_v37  ;;  %v1399_v10 = vmul.f32 %v1812_v58, %v1560_v40  ;;  %v1575_v15 = vpack.c.bf16 %v1425_v61, %v1424_v57 }
 0x17a   :  { %v1415_v5 = vadd.f32 %v1561_v59, %v1401_v63  ;;  %1584 = vst [vmem:[#allocation8 + $0x18] sm:$0xff] %v1580_v0   ;;  %v1422_v32 = vmax.f32 %v1414_v62, 0.0 }
 0x17b   :  { %v1413_v12 = vadd.f32 %v1561_v59, %v1399_v10  ;;  %1583 = vst [vmem:[#allocation8 + $0x10] sm:$0xff] %v1575_v15   ;;  %v1420_v48 = vmax.f32 %v1412_v6, 0.0 }
 0x17c   :  { %v1423_v43 = vmax.f32 %v1415_v5, 0.0 }
 0x17d   :  { %v1421_v4 = vmax.f32 %v1413_v12, 0.0 }
 0x17e   :  { %v1570_v14 = vpack.c.bf16 %v1423_v43, %v1422_v32 }
 0x17f   :  { %v1565_v3 = vpack.c.bf16 %v1421_v4, %v1420_v48 }
 0x180   :  { %1582 = vst [vmem:[#allocation8 + $0x8] sm:$0xff] %v1570_v14  }
 0x181   :  { %1566 = vst [vmem:[#allocation8] sm:$0xff] %v1565_v3  }
 0x182   :  { %2000 = shalt.err (!%p1997_p6)
}
 0x183   :  { %s2001_s13 = scalar_lea.hbm %s2382_s5, 512 }
 0x184   :  { %p2002_p7 = scmp.ne.s32.totalorder %s2382_s5, %s2001_s13  ;;  %p2005_p8 = scmp.lt.u32.totalorder %s2001_s13, %s2382_s5 }
 0x186   :  { %p2007_p9 = pnand %p2005_p8, %p2002_p7 }
 0x188   :  { %2010 = shalt.err (!%p2007_p9)
}
 0x189   :  { %1455 = dma.vmem_to_hbm [thread:$0]  %s1450_s4, 512, %s2382_s5, [#allocation4], %s2019_s6, %s2019_s6, %s2020_s7  }
 0x18a   :  { %2015 = dma.done.wait [#allocation4], 512  }
 0x18b   :  { %2016 = vsyncadd [#allocation4], 4294966784 }
 0x18c   :  { %1459 = vsyncpa [#allocation3], 1 }
 0x18d   :  { %1460 = vsyncpa [#allocation6], 1 }
 0x18e   :  { %1461 = vsyncpa [#allocation4], 1 }

</bundles_post_ra>
